<compile_context>
chip_gen: v5e
topology: v5e:2x2
jax: 0.10.0
libtpu: 0.0.40
codegen_flags: <defaults>
</compile_context>

<pallas_src>
import functools

import jax
import jax.numpy as jnp
from jax.experimental import pallas as pl
from jax.experimental.pallas import tpu as pltpu

_LANE = 128


def _round_up(x, m):
    return ((x + m - 1) // m) * m


def _fold_lanes(x):
    """Sum a (C, n) array over 128-wide lane groups -> (C, 128).  Pure VALU."""
    _, n = x.shape
    if n == _LANE:
        return x
    acc = x[:, 0:_LANE]
    for k in range(1, n // _LANE):
        acc = acc + x[:, k * _LANE:(k + 1) * _LANE]
    return acc


def _dice_sums_kernel(preds_ref, targ_ref, out_ref, *, ignore_index, hw,
                      tile_n, chunk, tiles_per_split, has_overhang):
    """Accumulate per-class [intersection, pred_sum, target_sum] lane strips.

    preds_ref: (1, C, tile_n)         float logits tile (one image, one tile)
    targ_ref : (1, 1, tile_n)         integer labels tile
    out_ref  : (1, 1, 3, C, 128) f32  accumulator, resident across pixel tiles
    """
    s = pl.program_id(1)   # pixel-split index ("parallel" — v7x core split)
    i = pl.program_id(2)   # pixel-tile index within split (reduction axis)

    @pl.when(i == 0)
    def _():
        out_ref[...] = jnp.zeros_like(out_ref)

    C = preds_ref.shape[1]
    n_chunks = tile_n // chunk
    tile_start = (s * tiles_per_split + i) * tile_n

    def accumulate(sanitize):
        def body(k, carry):
            inter_acc, pred_acc, targ_acc = carry
            off = pl.multiple_of(k * chunk, chunk)
            logits = preds_ref[0, :, pl.ds(off, chunk)].astype(jnp.float32)  # (C, chunk)
            t = targ_ref[0, :, pl.ds(off, chunk)].astype(jnp.int32)          # (1, chunk)

            valid = t != ignore_index                                        # (1, chunk)
            if sanitize:
                # Tail tile: lanes past H*W hold unspecified data (possibly
                # NaN/Inf).  Zero the logits there so nothing can leak into
                # pred_sum via NaN * 0.
                pos = jax.lax.broadcasted_iota(jnp.int32, (1, chunk), 1) \
                    + (tile_start + off)
                in_bounds = pos < hw
                valid = valid & in_bounds
                logits = jnp.where(in_bounds, logits, 0.0)

            # Softmax over the class (sublane) axis.
            m = jnp.max(logits, axis=0, keepdims=True)
            e = jnp.exp(logits - m)
            denom = jnp.sum(e, axis=0, keepdims=True)
            # Fold the ignore/valid mask into the (1, chunk) scale instead of
            # a (C, chunk) select on probs (saves ~1 VALU op/element).
            scale = jnp.where(valid, pl.reciprocal(denom, approx=False), 0.0)
            probs = e * scale                                                # (C, chunk)

            # One-hot of targets; invalid pixels map to -1 -> all-zero columns.
            t_clean = jnp.where(valid, t, -1)
            class_ids = jax.lax.broadcasted_iota(jnp.int32, (C, chunk), 0)
            onehot = (class_ids == t_clean).astype(jnp.float32)              # (C, chunk)

            inter_acc = inter_acc + _fold_lanes(probs * onehot)
            pred_acc = pred_acc + _fold_lanes(probs)
            targ_acc = targ_acc + _fold_lanes(onehot)
            return inter_acc, pred_acc, targ_acc

        zeros = jnp.zeros((C, _LANE), jnp.float32)
        inter_acc, pred_acc, targ_acc = jax.lax.fori_loop(
            0, n_chunks, body, (zeros, zeros, zeros))
        out_ref[0, 0, 0] += inter_acc
        out_ref[0, 0, 1] += pred_acc
        out_ref[0, 0, 2] += targ_acc

    if not has_overhang:
        # Every pixel position of every tile is in bounds: fast path only.
        accumulate(sanitize=False)
    else:
        is_tail = (tile_start + tile_n) > hw

        @pl.when(jnp.logical_not(is_tail))
        def _():
            accumulate(sanitize=False)

        @pl.when(is_tail)
        def _():
            accumulate(sanitize=True)


def dice_loss(preds, targets, *, num_classes, ignore_index=255, eps=1e-6,
              block_bytes=2 << 20, max_chunk=512):
    """Dice loss matching the PyTorch DiceLoss.forward semantics.

    preds  : (B, C, H, W) float logits (f32 or bf16; math is done in f32)
    targets: (B, H, W)    integer class indices (any <=32-bit integer dtype)
    """
    B, C, H, W = preds.shape
    assert C == num_classes
    HW = H * W

    # Free reshapes only (no transpose, no pad, no dtype pass over HBM).
    preds_r = preds.reshape(B, C, HW)
    targ_r = targets.reshape(B, 1, HW)
    if jnp.dtype(targ_r.dtype).itemsize > 4:
        targ_r = targ_r.astype(jnp.int32)

    itemsize = jnp.dtype(preds.dtype).itemsize
    t_itemsize = jnp.dtype(targ_r.dtype).itemsize

    # Compute-chunk size: bound the live vreg set (~5 live (C, chunk) f32
    # temporaries) well inside the 64 x 4 KiB vector register file.
    hw_pad = _round_up(HW, _LANE)
    chunk = max(_LANE, (max_chunk // _LANE) * _LANE)
    while chunk > _LANE and 5 * C * chunk * 4 > (96 << 10):
        chunk //= 2
    chunk = min(chunk, hw_pad)

    # DMA tile size: target ~block_bytes of logits per grid step so the
    # pipeline amortizes its fixed per-step overhead.
    tile_n = max(chunk, (block_bytes // (C * itemsize) // chunk) * chunk)
    tile_n = min(tile_n, _round_up(HW, chunk))
    n_tiles = pl.cdiv(HW, tile_n)

    # Optional pixel-axis split: extra "parallel" grid axis so both v7x
    # TensorCores stay busy when B == 1 / odd.  Enabled only when it divides
    # evenly (never produces fully out-of-bounds blocks); harmless on v5e/v6e.
    n_splits = 2 if (n_tiles >= 2 and n_tiles % 2 == 0) else 1
    tiles_per_split = n_tiles // n_splits

    has_overhang = n_tiles * tile_n > HW   # last tile has an OOB lane tail

    kernel = functools.partial(
        _dice_sums_kernel, ignore_index=ignore_index, hw=HW, tile_n=tile_n,
        chunk=chunk, tiles_per_split=tiles_per_split, has_overhang=has_overhang)

    # VMEM budget from the actual buffers; capped at 32 MiB (v7x has 64 MiB).
    est = (2 * C * tile_n * itemsize        # double-buffered logits block
           + 2 * tile_n * t_itemsize        # double-buffered targets block
           + 2 * 3 * C * _LANE * 4          # resident accumulator block
           + (2 << 20))                     # per-chunk temporaries + margin
    vmem_limit = int(min(max(2 * est, 24 << 20), 32 << 20))

    sums = pl.pallas_call(
        kernel,
        out_shape=jax.ShapeDtypeStruct((B, n_splits, 3, C, _LANE), jnp.float32),
        grid_spec=pltpu.PrefetchScalarGridSpec(
            num_scalar_prefetch=0,
            grid=(B, n_splits, tiles_per_split),
            in_specs=[
                pl.BlockSpec((1, C, tile_n),
                             lambda b, s, i: (b, 0, s * tiles_per_split + i)),
                pl.BlockSpec((1, 1, tile_n),
                             lambda b, s, i: (b, 0, s * tiles_per_split + i)),
            ],
            out_specs=pl.BlockSpec((1, 1, 3, C, _LANE),
                                   lambda b, s, i: (b, s, 0, 0, 0)),
        ),
        compiler_params=pltpu.CompilerParams(
            dimension_semantics=("parallel", "parallel", "arbitrary"),
            vmem_limit_bytes=vmem_limit,
        ),
    )(preds_r, targ_r)

    # Tiny final reduction in plain JAX: fold batch/split partials + lane strips.
    sums = jnp.sum(sums, axis=(0, 1, 4))       # (3, C)
    intersection, pred_sum, targ_sum = sums[0], sums[1], sums[2]
    union = pred_sum + targ_sum

    dice_per_class = (2.0 * intersection + eps) / (union + eps)
    present = targ_sum > eps
    n_present = jnp.sum(present.astype(jnp.float32))
    mean_present = jnp.sum(jnp.where(present, dice_per_class, 0.0)) / jnp.maximum(n_present, 1.0)
    dice = jnp.where(n_present > 0, mean_present, jnp.mean(dice_per_class))
    return 1.0 - dice


def dice_loss_ref(preds, targets, *, num_classes, ignore_index=255, eps=1e-6):
    """Pure-JAX reference mirroring the PyTorch module (for verification)."""
    probs = jax.nn.softmax(preds.astype(jnp.float32), axis=1)
    valid = (targets != ignore_index)
    t_clean = jnp.where(valid, targets, 0)
    onehot = jax.nn.one_hot(t_clean, num_classes, dtype=jnp.float32)     # (B,H,W,C)
    onehot = jnp.transpose(onehot, (0, 3, 1, 2))                         # (B,C,H,W)
    valid_f = valid[:, None, :, :].astype(jnp.float32)
    probs = probs * valid_f
    onehot = onehot * valid_f
    inter = jnp.sum(probs * onehot, axis=(0, 2, 3))
    union = jnp.sum(probs, axis=(0, 2, 3)) + jnp.sum(onehot, axis=(0, 2, 3))
    dpc = (2 * inter + eps) / (union + eps)
    present = jnp.sum(onehot, axis=(0, 2, 3)) > eps
    n_present = jnp.sum(present.astype(jnp.float32))
    mean_present = jnp.sum(jnp.where(present, dpc, 0.0)) / jnp.maximum(n_present, 1.0)
    dice = jnp.where(n_present > 0, mean_present, jnp.mean(dpc))
    return 1.0 - dice


if __name__ == "__main__":
    num_classes = 4
    ignore_index = 255

    # --- main check: B=2, C=4, 16x16 (single tile, fast path) ---
    key = jax.random.PRNGKey(0)
    B, C, H, W = 2, 4, 16, 16
    k1, k2, k3 = jax.random.split(key, 3)
    preds = jax.random.normal(k1, (B, C, H, W), dtype=jnp.float32)
    targets = jax.random.randint(k2, (B, H, W), 0, num_classes, dtype=jnp.int32)
    ignore_mask = jax.random.bernoulli(k3, 0.1, (B, H, W))
    targets = jnp.where(ignore_mask, ignore_index, targets)

    loss = jax.block_until_ready(
        dice_loss(preds, targets, num_classes=num_classes, ignore_index=ignore_index))
    loss_ref = jax.block_until_ready(
        dice_loss_ref(preds, targets, num_classes=num_classes, ignore_index=ignore_index))
    assert jnp.allclose(loss, loss_ref, atol=1e-5, rtol=1e-5), (loss, loss_ref)

    # --- secondary check: forced small tile to exercise the multi-tile
    # reduction, the multi-chunk fori_loop, lane folding and the pixel split.
    B2, H2, W2 = 1, 32, 64
    k4, k5, k6 = jax.random.split(jax.random.PRNGKey(1), 3)
    preds2 = jax.random.normal(k4, (B2, C, H2, W2), dtype=jnp.float32)
    targets2 = jax.random.randint(k5, (B2, H2, W2), 0, num_classes, dtype=jnp.int32)
    targets2 = jnp.where(jax.random.bernoulli(k6, 0.1, (B2, H2, W2)),
                         ignore_index, targets2)

    loss2 = jax.block_until_ready(
        dice_loss(preds2, targets2, num_classes=num_classes,
                  ignore_index=ignore_index, block_bytes=8 << 10, max_chunk=256))
    loss2_ref = jax.block_until_ready(
        dice_loss_ref(preds2, targets2, num_classes=num_classes, ignore_index=ignore_index))
    assert jnp.allclose(loss2, loss2_ref, atol=1e-5, rtol=1e-5), (loss2, loss2_ref)

    print("KERNEL_OK")
</pallas_src>

<mosaic_0001>
module attributes {stable_mosaic.version = 11 : i64} {
  func.func @_dice_sums_kernel(%arg0: i32, %arg1: i32, %arg2: i32, %arg3: memref<1x4x256xf32, #tpu.memory_space<vmem>>, %arg4: memref<1x1x256xi32, #tpu.memory_space<vmem>>, %arg5: memref<1x1x3x4x128xf32, #tpu.memory_space<vmem>>) attributes {dimension_semantics = [#tpu.dimension_semantics<parallel>, #tpu.dimension_semantics<parallel>, #tpu.dimension_semantics<arbitrary>], iteration_bounds = array<i64: 2, 1, 1>, scalar_prefetch = 0 : i64, scratch_operands = 0 : i64, tpu.core_type = #tpu.core_type<tc>, window_params = [{transform_indices = @transform_0, window_bounds = array<i64: 1, 4, 256>}, {transform_indices = @transform_1, window_bounds = array<i64: 1, 1, 256>}, {transform_indices = @transform_2, window_bounds = array<i64: 1, 1, 3, 4, 128>}]} {
    %c0_i32 = arith.constant 0 : i32
    %0 = arith.cmpi eq, %arg2, %c0_i32 : i32
    %1 = arith.extui %0 : i1 to i32
    %c0_i32_0 = arith.constant 0 : i32
    %2 = arith.cmpi ne, %1, %c0_i32_0 : i32
    scf.if %2 {
      %cst_36 = arith.constant 0.000000e+00 : f32
      %64 = vector.broadcast %cst_36 : f32 to vector<1x1x3x4x128xf32>
      %c0_37 = arith.constant 0 : index
      %c0_38 = arith.constant 0 : index
      %c0_39 = arith.constant 0 : index
      %c0_40 = arith.constant 0 : index
      %c0_41 = arith.constant 0 : index
      %65 = vector.load %arg5[%c0_37, %c0_38, %c0_39, %c0_40, %c0_41] : memref<1x1x3x4x128xf32, #tpu.memory_space<vmem>>, vector<1x1x3x4x128xf32>
      tpu.vector_store %arg5[%c0_37, %c0_38, %c0_39, %c0_40, %c0_41], %64 {strides = array<i32>} : memref<1x1x3x4x128xf32, #tpu.memory_space<vmem>>, vector<1x1x3x4x128xf32>,
    } else {
    }
    %cst = arith.constant 0.000000e+00 : f32
    %3 = vector.broadcast %cst : f32 to vector<4x128xf32>
    %c0_i32_1 = arith.constant 0 : i32
    %c256_i32 = arith.constant 256 : i32
    %4 = arith.muli %c0_i32_1, %c256_i32 : i32
    %5 = tpu.assume_multiple %4, 256 : i32
    %c0 = arith.constant 0 : index
    %c0_2 = arith.constant 0 : index
    %6 = arith.index_cast %5 : i32 to index
    %7 = vector.load %arg3[%c0, %c0_2, %6] : memref<1x4x256xf32, #tpu.memory_space<vmem>>, vector<1x4x256xf32>
    %8 = vector.shape_cast %7 : vector<1x4x256xf32> to vector<4x256xf32>
    %c0_3 = arith.constant 0 : index
    %c0_4 = arith.constant 0 : index
    %9 = arith.index_cast %5 : i32 to index
    %10 = vector.load %arg4[%c0_3, %c0_4, %9] : memref<1x1x256xi32, #tpu.memory_space<vmem>>, vector<1x1x256xi32>
    %11 = vector.shape_cast %10 : vector<1x1x256xi32> to vector<1x256xi32>
    %c255_i32 = arith.constant 255 : i32
    %12 = vector.broadcast %c255_i32 : i32 to vector<1x256xi32>
    %13 = arith.cmpi ne, %11, %12 : vector<1x256xi32>
    %cst_5 = arith.constant dense<0xFF800000> : vector<256xf32>
    %14 = vector.multi_reduction <maximumf>, %8, %cst_5 [0] : vector<4x256xf32> to vector<256xf32>
    %15 = vector.shape_cast %14 : vector<256xf32> to vector<1x256xf32>
    %16 = vector.broadcast %15 : vector<1x256xf32> to vector<4x256xf32>
    %17 = arith.subf %8, %16 : vector<4x256xf32>
    %18 = math.exp %17 : vector<4x256xf32>
    %cst_6 = arith.constant dense<0.000000e+00> : vector<256xf32>
    %19 = vector.multi_reduction <add>, %18, %cst_6 [0] : vector<4x256xf32> to vector<256xf32>
    %20 = vector.shape_cast %19 : vector<256xf32> to vector<1x256xf32>
    %21 = tpu.reciprocal %20 : vector<1x256xf32> -> vector<1x256xf32>
    %cst_7 = arith.constant 0.000000e+00 : f32
    %22 = vector.broadcast %cst_7 : f32 to vector<1x256xf32>
    %23 = arith.select %13, %21, %22 : vector<1x256xi1>, vector<1x256xf32>
    %24 = vector.broadcast %23 : vector<1x256xf32> to vector<4x256xf32>
    %25 = arith.mulf %18, %24 : vector<4x256xf32>
    %c-1_i32 = arith.constant -1 : i32
    %26 = vector.broadcast %c-1_i32 : i32 to vector<1x256xi32>
    %27 = arith.select %13, %11, %26 : vector<1x256xi1>, vector<1x256xi32>
    %28 = tpu.iota {dimensions = array<i32: 0>} : vector<4x256xi32>
    %29 = vector.broadcast %27 : vector<1x256xi32> to vector<4x256xi32>
    %30 = arith.cmpi eq, %28, %29 : vector<4x256xi32>
    %31 = arith.extui %30 : vector<4x256xi1> to vector<4x256xi32>
    %32 = arith.sitofp %31 : vector<4x256xi32> to vector<4x256xf32>
    %33 = arith.mulf %25, %32 : vector<4x256xf32>
    %34 = vector.extract_strided_slice %33 {offsets = [0, 0], sizes = [4, 128], strides = [1, 1]} : vector<4x256xf32> to vector<4x128xf32>
    %35 = vector.extract_strided_slice %33 {offsets = [0, 128], sizes = [4, 128], strides = [1, 1]} : vector<4x256xf32> to vector<4x128xf32>
    %36 = arith.addf %34, %35 : vector<4x128xf32>
    %37 = arith.addf %3, %36 : vector<4x128xf32>
    %38 = vector.extract_strided_slice %25 {offsets = [0, 0], sizes = [4, 128], strides = [1, 1]} : vector<4x256xf32> to vector<4x128xf32>
    %39 = vector.extract_strided_slice %25 {offsets = [0, 128], sizes = [4, 128], strides = [1, 1]} : vector<4x256xf32> to vector<4x128xf32>
    %40 = arith.addf %38, %39 : vector<4x128xf32>
    %41 = arith.addf %3, %40 : vector<4x128xf32>
    %42 = vector.extract_strided_slice %32 {offsets = [0, 0], sizes = [4, 128], strides = [1, 1]} : vector<4x256xf32> to vector<4x128xf32>
    %43 = vector.extract_strided_slice %32 {offsets = [0, 128], sizes = [4, 128], strides = [1, 1]} : vector<4x256xf32> to vector<4x128xf32>
    %44 = arith.addf %42, %43 : vector<4x128xf32>
    %45 = arith.addf %3, %44 : vector<4x128xf32>
    %c1_i32 = arith.constant 1 : i32
    %c0_8 = arith.constant 0 : index
    %c0_9 = arith.constant 0 : index
    %c0_10 = arith.constant 0 : index
    %c0_11 = arith.constant 0 : index
    %c0_12 = arith.constant 0 : index
    %46 = vector.load %arg5[%c0_8, %c0_9, %c0_10, %c0_11, %c0_12] : memref<1x1x3x4x128xf32, #tpu.memory_space<vmem>>, vector<1x1x1x4x128xf32>
    %47 = vector.shape_cast %46 : vector<1x1x1x4x128xf32> to vector<4x128xf32>
    %48 = arith.addf %47, %37 : vector<4x128xf32>
    %c0_13 = arith.constant 0 : index
    %c0_14 = arith.constant 0 : index
    %c0_15 = arith.constant 0 : index
    %c0_16 = arith.constant 0 : index
    %c0_17 = arith.constant 0 : index
    %49 = vector.load %arg5[%c0_13, %c0_14, %c0_15, %c0_16, %c0_17] : memref<1x1x3x4x128xf32, #tpu.memory_space<vmem>>, vector<1x1x1x4x128xf32>
    %50 = vector.shape_cast %49 : vector<1x1x1x4x128xf32> to vector<4x128xf32>
    %51 = vector.shape_cast %48 : vector<4x128xf32> to vector<1x1x1x4x128xf32>
    tpu.vector_store %arg5[%c0_13, %c0_14, %c0_15, %c0_16, %c0_17], %51 {strides = array<i32>} : memref<1x1x3x4x128xf32, #tpu.memory_space<vmem>>, vector<1x1x1x4x128xf32>,
    %c0_18 = arith.constant 0 : index
    %c0_19 = arith.constant 0 : index
    %c1 = arith.constant 1 : index
    %c0_20 = arith.constant 0 : index
    %c0_21 = arith.constant 0 : index
    %52 = vector.load %arg5[%c0_18, %c0_19, %c1, %c0_20, %c0_21] : memref<1x1x3x4x128xf32, #tpu.memory_space<vmem>>, vector<1x1x1x4x128xf32>
    %53 = vector.shape_cast %52 : vector<1x1x1x4x128xf32> to vector<4x128xf32>
    %54 = arith.addf %53, %41 : vector<4x128xf32>
    %c0_22 = arith.constant 0 : index
    %c0_23 = arith.constant 0 : index
    %c1_24 = arith.constant 1 : index
    %c0_25 = arith.constant 0 : index
    %c0_26 = arith.constant 0 : index
    %55 = vector.load %arg5[%c0_22, %c0_23, %c1_24, %c0_25, %c0_26] : memref<1x1x3x4x128xf32, #tpu.memory_space<vmem>>, vector<1x1x1x4x128xf32>
    %56 = vector.shape_cast %55 : vector<1x1x1x4x128xf32> to vector<4x128xf32>
    %57 = vector.shape_cast %54 : vector<4x128xf32> to vector<1x1x1x4x128xf32>
    tpu.vector_store %arg5[%c0_22, %c0_23, %c1_24, %c0_25, %c0_26], %57 {strides = array<i32>} : memref<1x1x3x4x128xf32, #tpu.memory_space<vmem>>, vector<1x1x1x4x128xf32>,
    %c0_27 = arith.constant 0 : index
    %c0_28 = arith.constant 0 : index
    %c2 = arith.constant 2 : index
    %c0_29 = arith.constant 0 : index
    %c0_30 = arith.constant 0 : index
    %58 = vector.load %arg5[%c0_27, %c0_28, %c2, %c0_29, %c0_30] : memref<1x1x3x4x128xf32, #tpu.memory_space<vmem>>, vector<1x1x1x4x128xf32>
    %59 = vector.shape_cast %58 : vector<1x1x1x4x128xf32> to vector<4x128xf32>
    %60 = arith.addf %59, %45 : vector<4x128xf32>
    %c0_31 = arith.constant 0 : index
    %c0_32 = arith.constant 0 : index
    %c2_33 = arith.constant 2 : index
    %c0_34 = arith.constant 0 : index
    %c0_35 = arith.constant 0 : index
    %61 = vector.load %arg5[%c0_31, %c0_32, %c2_33, %c0_34, %c0_35] : memref<1x1x3x4x128xf32, #tpu.memory_space<vmem>>, vector<1x1x1x4x128xf32>
    %62 = vector.shape_cast %61 : vector<1x1x1x4x128xf32> to vector<4x128xf32>
    %63 = vector.shape_cast %60 : vector<4x128xf32> to vector<1x1x1x4x128xf32>
    tpu.vector_store %arg5[%c0_31, %c0_32, %c2_33, %c0_34, %c0_35], %63 {strides = array<i32>} : memref<1x1x3x4x128xf32, #tpu.memory_space<vmem>>, vector<1x1x1x4x128xf32>,
    return
  }
  func.func @transform_0(%arg0: i32, %arg1: i32, %arg2: i32) -> (i32, i32, i32) {
    %c1_i32 = arith.constant 1 : i32
    %0 = arith.muli %arg1, %c1_i32 : i32
    %1 = arith.addi %0, %arg2 : i32
    %c0_i32 = arith.constant 0 : i32
    %c0_i32_0 = arith.constant 0 : i32
    return %arg0, %c0_i32, %1 : i32, i32, i32
  }
  func.func @transform_1(%arg0: i32, %arg1: i32, %arg2: i32) -> (i32, i32, i32) {
    %c1_i32 = arith.constant 1 : i32
    %0 = arith.muli %arg1, %c1_i32 : i32
    %1 = arith.addi %0, %arg2 : i32
    %c0_i32 = arith.constant 0 : i32
    %c0_i32_0 = arith.constant 0 : i32
    return %arg0, %c0_i32, %1 : i32, i32, i32
  }
  func.func @transform_2(%arg0: i32, %arg1: i32, %arg2: i32) -> (i32, i32, i32, i32, i32) {
    %c0_i32 = arith.constant 0 : i32
    %c0_i32_0 = arith.constant 0 : i32
    %c0_i32_1 = arith.constant 0 : i32
    %c0_i32_2 = arith.constant 0 : i32
    return %arg0, %arg1, %c0_i32, %c0_i32_0, %c0_i32_1 : i32, i32, i32, i32, i32
  }
}

</mosaic_0001>

<bundles_post_ra>
// kernel: tpu_custom_call.1
= control target key start
LH: loop header
LB: loop body
LE: loop exit
PB: predicated region body
PF: predicated region fallthrough
CT: control target
= control target key end

     0   :  { %7 = vsyncpa [#allocation3], 0  ;;  %s955_s0 = inlined_call_operand.hbm [shape: f32[2,4,256], index: 0, kind: input, shape index: {}]   ;;  %s956_s1 = inlined_call_operand.hbm [shape: s32[2,1,256], index: 1, kind: input, shape index: {}]   ;;  %s957_s2 = inlined_call_operand.hbm [shape: f32[2,1,3,4,128], index: 2, kind: output, shape index: {}]  }
   0x1   :  { %9 = vsyncpa [#allocation3 + $0x1], 0 }
   0x2   :  { %10 = vsyncpa [#allocation6], 0 }
   0x3   :  { %12 = vsyncpa [#allocation6 + $0x1], 0 }
   0x4   :  { %13 = vsyncpa [#allocation4], 0 }
   0x5   :  { %15 = vsyncpa [#allocation4 + $0x1], 0  ;;  %s782_s9 = smov 0   ;;  %s784_s10 = smov 0  }
   0x6   :  { %s786_s11 = smov 0   ;;  %s788_s12 = smov 0  }
   0x7   :  { %s790_s13 = smov 0   ;;  %s792_s14 = smov 0  }
   0x8 LB: > { %s516_s15 = sadd.s32 4294967295, %s762_s14   ;;  %s517_s16 = sadd.s32 4294967294, %s762_s14   ;;  %s762_s14 = sphi %s792_s14, %s21_s14   ;;  %s758_s13 = sphi %s790_s13, %s967_s13   ;;  %s754_s12 = sphi %s788_s12, %s966_s12   ;;  %s750_s11 = sphi %s786_s11, %s965_s11   ;;  %s746_s10 = sphi %s784_s10, %s964_s10   ;;  %s742_s9 = sphi %s782_s9, %s963_s9  }
   0x9   : > { %s40_s17 = sadd.s32 1, %s758_s13  ;;  %s51_s18 = sadd.s32 1, %s750_s11 }
   0xa   : > { %p42_p0 = scmp.ge.s32.totalorder %s40_s17, 2  ;;  %p58_p1 = scmp.ne.s32.totalorder %s750_s11, %s746_s10 }
   0xb   : > { %p59_p2 = scmp.eq.s32.totalorder %s762_s14, 0  ;;  %p64_p3 = scmp.ne.s32.totalorder %s746_s10, %s742_s9 }
   0xc   : > { %s969_s17 = smov (%p42_p0, %s40_s17), 0  ;;  %p65_p5 = scmp.eq.s32.totalorder %s516_s15, 0 }
   0xd   : > { %p823_p4 = por %p59_p2, %p58_p1  ;;  %s46_s20 = ssub.s32 %s758_s13, %s969_s17 }
   0xe   : > { %p120_p6 = scmp.eq.s32.totalorder %s516_s15, 1  ;;  %p49_p7 = scmp.eq.s32.totalorder %s46_s20, 0 }
   0xf   : > { %p829_p8 = por %p65_p5, %p64_p3  ;;  %p126_p10 = scmp.eq.s32.totalorder %s517_s16, 1 }
  0x10   : > { %p833_p9 = por %p120_p6, %p58_p1  ;;  %p519_p12 = scmp.ge.s32.totalorder %s762_s14, 2 }
  0x11   : > { %s838_s23 = scalar_select %p49_p7, %s750_s11, %s51_s18  }
  0x12   : > { %p840_p11 = por %p126_p10, %p64_p3  ;;  %p557_p13 = scmp.lt.s32.totalorder %s762_s14, 2 }
  0x13   : > { %s146_s25 = sand.u32 1, %s750_s11   ;;  %s537_s27 = sshll.u32 %s758_s13, 3 }
  0x14   : > { %s520_s26 = sshll.u32 %s146_s25, 3  ;;  %s158_s30 = scalar_lea.hbm %s955_s0, %s537_s27 }
  0x15   : > { %s150_s3 = scalar_lea.vmem [#allocation2], %s520_s26  ;;  %s160_s5 = sshll.u32 %s158_s30, 4  ;;  %s161_s5 = int_to_ptr.hbm [resolvable:$true] %s160_s5 }
  0x16   : > { %s162_s4 = sshll.u32 %s150_s3, 4  ;;  %p853_p0 = pnand %p557_p13, %p823_p4  ;;  %s163_s4 = int_to_ptr.vmem [resolvable:$true] %s162_s4 }
  0x17   : > { %p525_p1 = scmp.ge.s32.totalorder %s762_s14, 1  ;;  %p189_p2 = scmp.lt.s32.totalorder %s762_s14, 3 }
  0x18   : > { %s147_s7 = scalar_lea.sflag [#allocation3], %s146_s25  ;;  %s523_s8 = sshll.u32 %s146_s25, 1 }
  0x19   : > { %549 = dma.hbm_to_vmem [thread:$0]  (!%p853_p0), %s161_s5, 128, %s163_s4, %s147_s7  }
  0x1a   : > { %p190_p3 = pnand %p525_p1, %p189_p2  ;;  %s524_s15 = sshll.u32 %s758_s13, 1 }
  0x1b   : > { %s180_s20 = scalar_lea.hbm %s956_s1, %s524_s15  ;;  %s173_s26 = scalar_lea.vmem [#allocation5], %s523_s8 }
  0x1c   : > { %s184_s19 = sshll.u32 %s173_s26, 4  ;;  %s182_s27 = sshll.u32 %s180_s20, 4  ;;  %s185_s19 = int_to_ptr.vmem [resolvable:$true] %s184_s19  ;;  %s183_s27 = int_to_ptr.hbm [resolvable:$true] %s182_s27 }
  0x1d   : > { %s170_s28 = scalar_lea.sflag [#allocation6], %s146_s25  ;;  %193 = sbr.rel (%p190_p3) target bundleno = 135 (0x87), region = 28 }
  0x1e   : > { %552 = dma.hbm_to_vmem [thread:$0]  (!%p853_p0), %s183_s27, 32, %s185_s19, %s170_s28  }
  0x1f   : > { %s868_s29 = sand.u32 (!%p190_p3), 1, %s746_s10  }
  0x20   : > { %s526_s30 = sshll.u32 (!%p190_p3), %s868_s29, 3  ;;  %s196_s3 = scalar_lea.sflag (!%p190_p3), [#allocation3], %s868_s29 }
  0x21   : > { %s199_s4 = scalar_lea.vmem (!%p190_p3), [#allocation2], %s526_s30 }
  0x22   : > { %729 = dma.done.wait (%p829_p8), %s196_s3, 128  }
  0x23   : > { %731 = vsyncadd (%p829_p8), %s196_s3, 4294967168  ;;  %s527_s25 = sshll.u32 %s868_s29, 1  ;;  %s206_s5 = scalar_lea.sflag [#allocation6], %s868_s29 }
  0x24   : > { %s878_s6 = scalar_lea.vmem [#allocation5], %s527_s25 }
  0x25   : > { %733 = dma.done.wait (%p829_p8), %s206_s5, 32  }
  0x26   : > { %735 = vsyncadd (%p829_p8), %s206_s5, 4294967264  ;;  %v247_v0 = vld [vmem:[%s199_s4] sm:$0xff]  ;;  %vm256_vm0 = vcmask 1043456   ;;  %s538_s21 = smul.u32 12, %s868_s29  ;;  %v764_v20 = vmov 0.0   ;;  %v342_v30 = vlaneseq  ;;  %vm330_vm11 = vcmask 1040384  }
  0x27   : > { %251 = vst [vmem:[#allocation1] ss:$2 sm:$0xff] %v247_v0  ;;  %v897_v23 = vld [vmem:[%s878_s6] sm:$0x3]  ;;  %s539_s8 = smul.u32 12, %s754_s12  ;;  %s382_s26 = scalar_lea.sflag [#allocation4], %s868_s29 }
  0x28   : > { %s888_s7 = scalar_lea.vmem [#allocation7], %s538_s21  ;;  %vm249_vm1 = vcmp.ne.s32.totalorder %v897_v23, 255  ;;  %v343_v36 = vshrl.u32 %v342_v30, 7  ;;  %s696_s3 = scalar_lea.hbm %s957_s2, 24 }
  0x29   : > { %245 = vst [vmem:[%s888_s7 + $0x4] sm:$0xf] %v764_v20  ;;  %v341_v33 = vsel %vm249_vm1, %v897_v23, 4294967295  ;;  %s395_s18 = scalar_lea.hbm %s957_s2, %s539_s8  ;;  %s396_s12 = sshll.u32 %s888_s7, 4  ;;  %s397_s12 = int_to_ptr.vmem [resolvable:$true] %s396_s12 }
  0x2a   : > { %244 = vst [vmem:[%s888_s7] sm:$0xf] %v764_v20  ;;  %v344_v39 = vperm.slane %v341_v33, 0  ;;  %v345_v40 = vperm.slane %v341_v33, 1  ;;  %s398_s20 = sshll.u32 %s395_s18, 4  ;;  %s399_s20 = int_to_ptr.hbm [resolvable:$true] %s398_s20 }
  0x2b   : > { %246 = vst [vmem:[%s888_s7 + $0x8] sm:$0xf] %v764_v20  ;;  %s690_s19 = sshra.s32 %s399_s20, 4  ;;  %s691_s19 = int_to_ptr.hbm [resolvable:$true] %s690_s19 }
  0x2c   : > { %vm346_vm2 = vcmp.eq.s32.totalorder %v343_v36, %v344_v39  ;;  %vm347_vm3 = vcmp.eq.s32.totalorder %v343_v36, %v345_v40  ;;  %s692_s27 = scalar_lea.hbm %s691_s19, 12  ;;  %p697_p7 = scmp.lt.s32.totalorder %s691_s19, %s957_s2 }
  0x2d   : > { %v528_v45 = vsel %vm346_vm2, 1.0, %v764_v20  ;;  %v529_v46 = vsel %vm347_vm3, 1.0, %v764_v20  ;;  %p693_p4 = scmp.ne.s32.totalorder %s691_s19, %s692_s27  ;;  %p698_p8 = scmp.lt.s32.totalorder %s696_s3, %s692_s27 }
  0x2e   : > { %v252_v1 = vld.sshfl [vmem:[#allocation1] sm:$0xff pattern:$0x75316420]  ;;  %v253_v2 = vld.sshfl [vmem:[#allocation1 + $0x8] sm:$0xff pattern:$0x75316420]  ;;  %v368_v47 = vadd.f32 %v529_v46, %v528_v45 }
  0x2f   : > { %v257_v3 = vsel %vm256_vm0, %v252_v1, -inf  ;;  %v264_v4 = vsel %vm256_vm0, %v253_v2, -inf  ;;  %p694_p5 = pnand %p693_p4, %p833_p9  ;;  %p699_p10 = por %p698_p8, %p697_p7 }
  0x30   : > { %v258_v5 = vrot.slane %v257_v3, 4  ;;  %v265_v6 = vrot.slane %v264_v4, 4 }
  0x31   : > { %p695_p6 = pneg %p694_p5 }
  0x32   : > { %v259_v7 = vmax.f32 %v257_v3, %v258_v5  ;;  %v266_v8 = vmax.f32 %v264_v4, %v265_v6  ;;  %v532_v48 = vld [vmem:[%s888_s7 + $0x8] sm:$0xf] }
  0x33   : > { %v379_v49 = vadd.f32 %v532_v48, %v368_v47  ;;  %p700_p13 = pnand %p699_p10, %p695_p6 }
  0x34   : > { %v260_v9 = vrot.slane %v259_v7, 2  ;;  %v267_v10 = vrot.slane %v266_v8, 2 }
  0x35   : > { %533 = vst [vmem:[%s888_s7 + $0x8] sm:$0xf] %v379_v49 }
  0x36   : > { %v261_v11 = vmax.f32 %v259_v7, %v260_v9  ;;  %v268_v12 = vmax.f32 %v266_v8, %v267_v10  ;;  %v354_v10 = vrot.slane %v529_v46, 4 }
  0x38   : > { %v262_v13 = vrot.slane %v261_v11, 1  ;;  %v269_v14 = vrot.slane %v268_v12, 1 }
  0x3a   : > { %v270_v15 = vmax.f32 %v268_v12, %v269_v14  ;;  %v263_v16 = vmax.f32 %v261_v11, %v262_v13  ;;  %v355_v14 = vsel %vm256_vm0, %v528_v45, %v354_v10 }
  0x3c   : > { %v273_v17 = vrot.slane %v270_v15, 4 }
  0x3e   : > { %v274_v18 = vsel %vm256_vm0, %v263_v16, %v273_v17 }
  0x3f   : > { %v276_v19 = vsub.f32 %v247_v0, %v274_v18  ;;  %v530_v18 = vld [vmem:[%s888_s7 + $0x4] sm:$0xf] }
  0x41   : > { %v277_v21 = vmul.f32 1.442695, %v276_v19 }
  0x43   : > { %610 = vpow2.f32 %v277_v21  ;;  %v370_v21 = vld [vmem:[%s888_s7] sm:$0xf] }
  0x49   : > { %v893_v22 = vpop.eup %610 }
  0x4a   : > { %280 = vst [vmem:[#allocation1] ss:$2 sm:$0xff] %v893_v22 }
  0x51   : > { %v281_v24 = vld.sshfl [vmem:[#allocation1] sm:$0xff pattern:$0x75316420]  ;;  %v282_v25 = vld.sshfl [vmem:[#allocation1 + $0x8] sm:$0xff pattern:$0x75316420] }
  0x52   : > { %v285_v26 = vsel %vm256_vm0, %v281_v24, 0.0  ;;  %v292_v27 = vsel %vm256_vm0, %v282_v25, 0.0 }
  0x53   : > { %v286_v28 = vrot.slane %v285_v26, 4  ;;  %v293_v29 = vrot.slane %v292_v27, 4 }
  0x55   : > { %v287_v31 = vadd.f32 %v286_v28, %v285_v26  ;;  %v294_v32 = vadd.f32 %v293_v29, %v292_v27 }
  0x57   : > { %v288_v34 = vrot.slane %v287_v31, 2  ;;  %v295_v35 = vrot.slane %v294_v32, 2 }
  0x59   : > { %v289_v37 = vadd.f32 %v288_v34, %v287_v31  ;;  %v296_v38 = vadd.f32 %v295_v35, %v294_v32 }
  0x5b   : > { %v290_v41 = vrot.slane %v289_v37, 1  ;;  %v297_v42 = vrot.slane %v296_v38, 1 }
  0x5d   : > { %v298_v43 = vadd.f32 %v297_v42, %v296_v38  ;;  %v291_v44 = vadd.f32 %v290_v41, %v289_v37 }
  0x5f   : > { %612 = vrcp.f32 %v298_v43  ;;  %v324_v56 = vand.u32 2147483648, %v298_v43  ;;  %v322_v58 = vand.u32 2147483647, %v298_v43  ;;  %v310_v60 = vand.u32 2147483648, %v291_v44 }
  0x60   : > { %614 = vrcp.f32 %v291_v44  ;;  %v308_v61 = vand.u32 2147483647, %v291_v44  ;;  %vm318_vm6 = vweird.f32 %v298_v43  ;;  %vm304_vm7 = vweird.f32 %v291_v44 }
  0x61   : > { %v325_v0 = vor.u32 1.1754944e-38, %v324_v56  ;;  %vm323_vm10 = vcmp.eq.f32.partialorder %v322_v58, 8.507059e+37  ;;  %v311_v3 = vor.u32 1.1754944e-38, %v310_v60 }
  0x62   : > { %vm309_vm12 = vcmp.eq.f32.partialorder %v308_v61, 8.507059e+37 }
  0x65   : > { %v613_v50 = vpop.eup %612 }
  0x66   : > { %v615_v51 = vpop.eup %614  ;;  %v314_v52 = vmul.f32 %v613_v50, %v298_v43  ;;  %vm319_vm4 = vweird.f32 %v613_v50 }
  0x67   : > { %v300_v53 = vmul.f32 %v615_v51, %v291_v44  ;;  %vm305_vm5 = vweird.f32 %v615_v51  ;;  %vm320_vm8 = vmor %vm318_vm6, %vm319_vm4 }
  0x68   : > { %v315_v54 = vsub.f32 1.0, %v314_v52  ;;  %vm306_vm9 = vmor %vm304_vm7, %vm305_vm5 }
  0x69   : > { %v301_v55 = vsub.f32 1.0, %v300_v53 }
  0x6a   : > { %v316_v57 = vmul.f32 %v613_v50, %v315_v54 }
  0x6b   : > { %v302_v59 = vmul.f32 %v615_v51, %v301_v55 }
  0x6c   : > { %v317_v62 = vadd.f32 %v613_v50, %v316_v57 }
  0x6d   : > { %v303_v63 = vadd.f32 %v615_v51, %v302_v59 }
  0x6e   : > { %v321_v1 = vsel %vm320_vm8, %v613_v50, %v317_v62 }
  0x6f   : > { %v307_v2 = vsel %vm306_vm9, %v615_v51, %v303_v63  ;;  %v326_v4 = vsel %vm323_vm10, %v325_v0, %v321_v1 }
  0x70   : > { %v329_v5 = vrot.slane %v326_v4, 7  ;;  %v312_v6 = vsel %vm309_vm12, %v311_v3, %v307_v2 }
  0x72   : > { %v331_v7 = vsel %vm330_vm11, %v312_v6, %v329_v5 }
  0x73   : > { %v333_v8 = vsel %vm249_vm1, %v331_v7, 0.0 }
  0x74   : > { %v336_v9 = vperm.slane %v333_v8, 1  ;;  %v335_v11 = vperm.slane %v333_v8, 0 }
  0x76   : > { %v337_v12 = vrot.slane %v336_v9, 4 }
  0x78   : > { %v338_v13 = vsel %vm256_vm0, %v335_v11, %v337_v12 }
  0x79   : > { %v340_v15 = vmul.f32 %v893_v22, %v338_v13 }
  0x7b   : > { %v364_v16 = vrot.slane %v340_v15, 4  ;;  %v357_v17 = vmul.f32 %v355_v14, %v340_v15 }
  0x7d   : > { %v366_v19 = vadd.f32 %v364_v16, %v340_v15  ;;  %v359_v20 = vrot.slane %v357_v17, 4 }
  0x7f   : > { %v375_v23 = vadd.f32 %v530_v18, %v366_v19  ;;  %v361_v24 = vadd.f32 %v359_v20, %v357_v17 }
  0x81   : > { %531 = vst [vmem:[%s888_s7 + $0x4] sm:$0xf] %v375_v23  ;;  %v371_v25 = vadd.f32 %v370_v21, %v361_v24 }
  0x83   : > { %372 = vst [vmem:[%s888_s7] sm:$0xf] %v371_v25 }
  0x84   : > { %703 = shalt.err (!%p700_p13)
}
  0x85   : > { %s765_s29 = smov 64   ;;  %s766_s5 = smov 4  }
  0x86   : > { %544 = dma.vmem_to_hbm [thread:$0]  (%p833_p9), %s397_s12, 192, %s399_s20, %s382_s26, %s765_s29, %s765_s29, %s766_s5  }
  0x87 PF: > { %s413_s6 = sand.u32 1, %s742_s9   ;;  %p554_p0 = pnand %p519_p12, %p840_p11 }
  0x88   : > { %s414_s21 = scalar_lea.sflag [#allocation4], %s413_s6 }
  0x89   : > { %p555_p1 = pneg %p554_p0 }
  0x8b   : > { %737 = dma.done.wait (%p555_p1), %s414_s21, 192  }
  0x8c   : > { %739 = vsyncadd (%p555_p1), %s414_s21, 4294967104  ;;  %s21_s14 = sadd.s32 1, %s762_s14   ;;  %s963_s9 = smov %s746_s10 }
  0x8d   : > { %p18_p2 = scmp.ge.s32.totalorder %s21_s14, 4   ;;  %s964_s10 = smov %s750_s11 }
  0x8e   : > { %s965_s11 = smov %s838_s23  ;;  %s966_s12 = smov %s758_s13 }
  0x8f   : > { %s967_s13 = smov %s969_s17  ;;  %20 = sbr.rel (!%p18_p2) target bundleno = 8 (0x8), region = 92 }
  0x94   :  { %420 = vsyncpa [#allocation3], 1 }
  0x95   :  { %422 = vsyncpa [#allocation3 + $0x1], 1 }
  0x96   :  { %423 = vsyncpa [#allocation6], 1 }
  0x97   :  { %425 = vsyncpa [#allocation6 + $0x1], 1 }
  0x98   :  { %426 = vsyncpa [#allocation4], 1 }
  0x99   :  { %428 = vsyncpa [#allocation4 + $0x1], 1 }

</bundles_post_ra>
